<compile_context>
chip_gen: v7x
topology: tpu7x:2x2x1
jax: 0.10.0
libtpu: 0.0.40
codegen_flags: <defaults>
</compile_context>

<pallas_src>
import functools

import jax
import jax.numpy as jnp
from jax.experimental import pallas as pl
from jax.experimental.pallas import tpu as pltpu

LANES = 128
MAX_TILE_ROWS = 512  # 512*128*4B = 256 KiB per input tile


def _round_up(x, m):
    return ((x + m - 1) // m) * m


def _hem_kernel(margin_ref, n_ref, pred_ref, real_ref, sum_ref, cnt_ref,
                acc_sum, acc_cnt, *, tile_rows):
    i = pl.program_id(0)

    @pl.when(i == 0)
    def _init():
        acc_sum[...] = jnp.zeros_like(acc_sum)
        acc_cnt[...] = jnp.zeros_like(acc_cnt)

    margin = margin_ref[0]
    n = n_ref[0]

    diff = real_ref[...] - pred_ref[...]

    # Global element index of each slot in this tile, to mask the padded tail.
    row_ids = jax.lax.broadcasted_iota(jnp.int32, (tile_rows, LANES), 0)
    col_ids = jax.lax.broadcasted_iota(jnp.int32, (tile_rows, LANES), 1)
    gidx = (i * tile_rows + row_ids) * LANES + col_ids
    valid = gidx < n

    mask = jnp.logical_and(jnp.abs(diff) > margin, valid)

    # Pure-VPU elementwise accumulation into VMEM vreg scratch.
    acc_sum[...] += jnp.where(mask, diff * diff, 0.0)
    acc_cnt[...] += jnp.where(mask, 1.0, 0.0)

    # Single cross-lane reduce + SMEM scalar write on the final step.
    @pl.when(i == pl.num_programs(0) - 1)
    def _finalize():
        sum_ref[0] = jnp.sum(acc_sum[...])
        cnt_ref[0] = jnp.sum(acc_cnt[...])


def hem_loss(pred, real, margin):
    """Pallas implementation of HEMLoss.forward. Returns a scalar f32."""
    assert pred.shape == real.shape
    pred = pred.astype(jnp.float32)
    real = real.astype(jnp.float32)

    n = pred.size
    rows_raw = -(-n // LANES)                       # ceil(n / 128)
    tile_rows = min(MAX_TILE_ROWS, _round_up(rows_raw, 8))
    padded_rows = _round_up(rows_raw, tile_rows)
    pad = padded_rows * LANES - n

    pred_flat = pred.reshape(-1)
    real_flat = real.reshape(-1)
    if pad > 0:
        # Pad region is explicitly masked out in-kernel (gidx < n), so padding
        # is semantically inert even for margin <= 0.
        pred_flat = jnp.pad(pred_flat, (0, pad))
        real_flat = jnp.pad(real_flat, (0, pad))
    pred2d = pred_flat.reshape(padded_rows, LANES)
    real2d = real_flat.reshape(padded_rows, LANES)

    grid = (padded_rows // tile_rows,)

    margin_arr = jnp.asarray([margin], dtype=jnp.float32)
    n_arr = jnp.asarray([n], dtype=jnp.int32)

    kernel = functools.partial(_hem_kernel, tile_rows=tile_rows)

    masked_sum, masked_cnt = pl.pallas_call(
        kernel,
        out_shape=(
            jax.ShapeDtypeStruct((1,), jnp.float32),
            jax.ShapeDtypeStruct((1,), jnp.float32),
        ),
        grid_spec=pltpu.PrefetchScalarGridSpec(
            num_scalar_prefetch=0,
            grid=grid,
            in_specs=[
                pl.BlockSpec(memory_space=pltpu.SMEM),   # margin
                pl.BlockSpec(memory_space=pltpu.SMEM),   # n (valid elements)
                pl.BlockSpec((tile_rows, LANES), lambda i: (i, 0)),
                pl.BlockSpec((tile_rows, LANES), lambda i: (i, 0)),
            ],
            out_specs=(
                pl.BlockSpec(memory_space=pltpu.SMEM),
                pl.BlockSpec(memory_space=pltpu.SMEM),
            ),
            scratch_shapes=[
                pltpu.VMEM((tile_rows, LANES), jnp.float32),
                pltpu.VMEM((tile_rows, LANES), jnp.float32),
            ],
        ),
        compiler_params=pltpu.CompilerParams(
            dimension_semantics=("arbitrary",),
        ),
    )(margin_arr, n_arr, pred2d, real2d)

    s = masked_sum[0]
    c = masked_cnt[0]
    # cond.sum() > 0  ->  mean over selected elements; else 0.0
    return jnp.where(c > 0.0, s / jnp.maximum(c, 1.0), 0.0)


def hem_loss_ref(pred, real, margin):
    """Pure-JAX reference matching the PyTorch semantics."""
    diff = real.astype(jnp.float32) - pred.astype(jnp.float32)
    mask = jnp.abs(diff) > margin
    c = jnp.sum(mask.astype(jnp.float32))
    s = jnp.sum(jnp.where(mask, diff * diff, 0.0))
    return jnp.where(c > 0.0, s / jnp.maximum(c, 1.0), 0.0)


if __name__ == "__main__":
    key = jax.random.PRNGKey(0)
    k_pred, k_real = jax.random.split(key)

    # Small NCHW-shaped inputs consistent with a regression-style loss.
    shape = (2, 4, 16, 16)
    pred = jax.random.normal(k_pred, shape, dtype=jnp.float32)
    real = jax.random.normal(k_real, shape, dtype=jnp.float32)
    margin = 0.5

    loss = jax.block_until_ready(hem_loss(pred, real, margin))
    ref = jax.block_until_ready(hem_loss_ref(pred, real, margin))
    assert jnp.allclose(loss, ref, rtol=1e-5, atol=1e-6), (loss, ref)

    # "No hard examples" branch (identical inputs -> no |diff| > margin).
    loss_zero = jax.block_until_ready(hem_loss(pred, pred, margin))
    assert float(loss_zero) == 0.0

    # Non-multiple-of-(8,128) shape exercises the padded-tail masking.
    shape2 = (3, 5, 7, 9)
    k1, k2 = jax.random.split(jax.random.PRNGKey(1))
    p2 = jax.random.normal(k1, shape2, dtype=jnp.float32)
    r2 = jax.random.normal(k2, shape2, dtype=jnp.float32)
    loss2 = jax.block_until_ready(hem_loss(p2, r2, margin))
    ref2 = jax.block_until_ready(hem_loss_ref(p2, r2, margin))
    assert jnp.allclose(loss2, ref2, rtol=1e-5, atol=1e-6), (loss2, ref2)

    print("KERNEL_OK")
</pallas_src>

<mosaic_0001>
module attributes {stable_mosaic.version = 11 : i64} {
  func.func @_hem_kernel(%arg0: i32, %arg1: memref<1xf32, #tpu.memory_space<smem>>, %arg2: memref<1xi32, #tpu.memory_space<smem>>, %arg3: memref<16x128xf32, #tpu.memory_space<vmem>>, %arg4: memref<16x128xf32, #tpu.memory_space<vmem>>, %arg5: memref<1xf32, #tpu.memory_space<smem>>, %arg6: memref<1xf32, #tpu.memory_space<smem>>, %arg7: memref<16x128xf32, #tpu.memory_space<vmem>>, %arg8: memref<16x128xf32, #tpu.memory_space<vmem>>) attributes {dimension_semantics = [#tpu.dimension_semantics<arbitrary>], iteration_bounds = array<i64: 1>, scalar_prefetch = 0 : i64, scratch_operands = 2 : i64, tpu.core_type = #tpu.core_type<tc>, window_params = [{transform_indices = @transform_0, window_bounds = array<i64: 1>}, {transform_indices = @transform_1, window_bounds = array<i64: 1>}, {transform_indices = @transform_2, window_bounds = array<i64: 16, 128>}, {transform_indices = @transform_3, window_bounds = array<i64: 16, 128>}, {transform_indices = @transform_4, window_bounds = array<i64: 1>}, {transform_indices = @transform_5, window_bounds = array<i64: 1>}]} {
    %c0_i32 = arith.constant 0 : i32
    %0 = arith.cmpi eq, %arg0, %c0_i32 : i32
    %1 = arith.extui %0 : i1 to i32
    %c0_i32_0 = arith.constant 0 : i32
    %2 = arith.cmpi ne, %1, %c0_i32_0 : i32
    scf.if %2 {
      %cst_18 = arith.constant 0.000000e+00 : f32
      %37 = vector.broadcast %cst_18 : f32 to vector<16x128xf32>
      %c0_19 = arith.constant 0 : index
      %c0_20 = arith.constant 0 : index
      %38 = vector.load %arg7[%c0_19, %c0_20] : memref<16x128xf32, #tpu.memory_space<vmem>>, vector<16x128xf32>
      tpu.vector_store %arg7[%c0_19, %c0_20], %37 {strides = array<i32>} : memref<16x128xf32, #tpu.memory_space<vmem>>, vector<16x128xf32>,
      %cst_21 = arith.constant 0.000000e+00 : f32
      %39 = vector.broadcast %cst_21 : f32 to vector<16x128xf32>
      %c0_22 = arith.constant 0 : index
      %c0_23 = arith.constant 0 : index
      %40 = vector.load %arg8[%c0_22, %c0_23] : memref<16x128xf32, #tpu.memory_space<vmem>>, vector<16x128xf32>
      tpu.vector_store %arg8[%c0_22, %c0_23], %39 {strides = array<i32>} : memref<16x128xf32, #tpu.memory_space<vmem>>, vector<16x128xf32>,
    } else {
    }
    %c0 = arith.constant 0 : index
    %3 = memref.load %arg1[%c0] : memref<1xf32, #tpu.memory_space<smem>>
    %c0_1 = arith.constant 0 : index
    %4 = memref.load %arg2[%c0_1] : memref<1xi32, #tpu.memory_space<smem>>
    %c0_2 = arith.constant 0 : index
    %c0_3 = arith.constant 0 : index
    %5 = vector.load %arg4[%c0_2, %c0_3] : memref<16x128xf32, #tpu.memory_space<vmem>>, vector<16x128xf32>
    %c0_4 = arith.constant 0 : index
    %c0_5 = arith.constant 0 : index
    %6 = vector.load %arg3[%c0_4, %c0_5] : memref<16x128xf32, #tpu.memory_space<vmem>>, vector<16x128xf32>
    %7 = arith.subf %5, %6 : vector<16x128xf32>
    %8 = tpu.iota {dimensions = array<i32: 0>} : vector<16x128xi32>
    %9 = tpu.iota {dimensions = array<i32: 1>} : vector<16x128xi32>
    %c16_i32 = arith.constant 16 : i32
    %10 = arith.muli %arg0, %c16_i32 : i32
    %11 = vector.broadcast %10 : i32 to vector<16x128xi32>
    %12 = arith.addi %11, %8 : vector<16x128xi32>
    %c128_i32 = arith.constant 128 : i32
    %13 = vector.broadcast %c128_i32 : i32 to vector<16x128xi32>
    %14 = arith.muli %12, %13 : vector<16x128xi32>
    %15 = arith.addi %14, %9 : vector<16x128xi32>
    %16 = vector.broadcast %4 : i32 to vector<16x128xi32>
    %17 = arith.cmpi slt, %15, %16 : vector<16x128xi32>
    %18 = math.absf %7 : vector<16x128xf32>
    %19 = vector.broadcast %3 : f32 to vector<16x128xf32>
    %20 = arith.cmpf ogt, %18, %19 : vector<16x128xf32>
    %21 = arith.andi %20, %17 : vector<16x128xi1>
    %c0_6 = arith.constant 0 : index
    %c0_7 = arith.constant 0 : index
    %22 = vector.load %arg7[%c0_6, %c0_7] : memref<16x128xf32, #tpu.memory_space<vmem>>, vector<16x128xf32>
    %23 = arith.mulf %7, %7 : vector<16x128xf32>
    %cst = arith.constant 0.000000e+00 : f32
    %24 = vector.broadcast %cst : f32 to vector<16x128xf32>
    %25 = arith.select %21, %23, %24 : vector<16x128xi1>, vector<16x128xf32>
    %26 = arith.addf %22, %25 : vector<16x128xf32>
    %c0_8 = arith.constant 0 : index
    %c0_9 = arith.constant 0 : index
    %27 = vector.load %arg7[%c0_8, %c0_9] : memref<16x128xf32, #tpu.memory_space<vmem>>, vector<16x128xf32>
    tpu.vector_store %arg7[%c0_8, %c0_9], %26 {strides = array<i32>} : memref<16x128xf32, #tpu.memory_space<vmem>>, vector<16x128xf32>,
    %c0_10 = arith.constant 0 : index
    %c0_11 = arith.constant 0 : index
    %28 = vector.load %arg8[%c0_10, %c0_11] : memref<16x128xf32, #tpu.memory_space<vmem>>, vector<16x128xf32>
    %cst_12 = arith.constant 1.000000e+00 : f32
    %cst_13 = arith.constant 0.000000e+00 : f32
    %29 = vector.broadcast %cst_12 : f32 to vector<16x128xf32>
    %30 = vector.broadcast %cst_13 : f32 to vector<16x128xf32>
    %31 = arith.select %21, %29, %30 : vector<16x128xi1>, vector<16x128xf32>
    %32 = arith.addf %28, %31 : vector<16x128xf32>
    %c0_14 = arith.constant 0 : index
    %c0_15 = arith.constant 0 : index
    %33 = vector.load %arg8[%c0_14, %c0_15] : memref<16x128xf32, #tpu.memory_space<vmem>>, vector<16x128xf32>
    tpu.vector_store %arg8[%c0_14, %c0_15], %32 {strides = array<i32>} : memref<16x128xf32, #tpu.memory_space<vmem>>, vector<16x128xf32>,
    %c0_i32_16 = arith.constant 0 : i32
    %34 = arith.cmpi eq, %arg0, %c0_i32_16 : i32
    %35 = arith.extui %34 : i1 to i32
    %c0_i32_17 = arith.constant 0 : i32
    %36 = arith.cmpi ne, %35, %c0_i32_17 : i32
    scf.if %36 {
      %c0_18 = arith.constant 0 : index
      %c0_19 = arith.constant 0 : index
      %37 = vector.load %arg7[%c0_18, %c0_19] : memref<16x128xf32, #tpu.memory_space<vmem>>, vector<16x128xf32>
      %38 = vector.shape_cast %37 : vector<16x128xf32> to vector<1x16x128xf32>
      %cst_20 = arith.constant dense<0.000000e+00> : vector<1xf32>
      %39 = vector.multi_reduction <add>, %38, %cst_20 [1, 2] : vector<1x16x128xf32> to vector<1xf32>
      %40 = vector.shape_cast %39 : vector<1xf32> to vector<1x1x1xf32>
      %41 = vector.extract %40[0, 0, 0] : f32 from vector<1x1x1xf32>
      %c0_21 = arith.constant 0 : index
      %42 = memref.load %arg5[%c0_21] : memref<1xf32, #tpu.memory_space<smem>>
      memref.store %41, %arg5[%c0_21] : memref<1xf32, #tpu.memory_space<smem>>
      %c0_22 = arith.constant 0 : index
      %c0_23 = arith.constant 0 : index
      %43 = vector.load %arg8[%c0_22, %c0_23] : memref<16x128xf32, #tpu.memory_space<vmem>>, vector<16x128xf32>
      %44 = vector.shape_cast %43 : vector<16x128xf32> to vector<1x16x128xf32>
      %cst_24 = arith.constant dense<0.000000e+00> : vector<1xf32>
      %45 = vector.multi_reduction <add>, %44, %cst_24 [1, 2] : vector<1x16x128xf32> to vector<1xf32>
      %46 = vector.shape_cast %45 : vector<1xf32> to vector<1x1x1xf32>
      %47 = vector.extract %46[0, 0, 0] : f32 from vector<1x1x1xf32>
      %c0_25 = arith.constant 0 : index
      %48 = memref.load %arg6[%c0_25] : memref<1xf32, #tpu.memory_space<smem>>
      memref.store %47, %arg6[%c0_25] : memref<1xf32, #tpu.memory_space<smem>>
    } else {
    }
    return
  }
  func.func @transform_0(%arg0: i32) -> i32 {
    %c0_i32 = arith.constant 0 : i32
    %c0_i32_0 = arith.constant 0 : i32
    return %c0_i32 : i32
  }
  func.func @transform_1(%arg0: i32) -> i32 {
    %c0_i32 = arith.constant 0 : i32
    %c0_i32_0 = arith.constant 0 : i32
    return %c0_i32 : i32
  }
  func.func @transform_2(%arg0: i32) -> (i32, i32) {
    %c0_i32 = arith.constant 0 : i32
    %c0_i32_0 = arith.constant 0 : i32
    return %arg0, %c0_i32 : i32, i32
  }
  func.func @transform_3(%arg0: i32) -> (i32, i32) {
    %c0_i32 = arith.constant 0 : i32
    %c0_i32_0 = arith.constant 0 : i32
    return %arg0, %c0_i32 : i32, i32
  }
  func.func @transform_4(%arg0: i32) -> i32 {
    %c0_i32 = arith.constant 0 : i32
    %c0_i32_0 = arith.constant 0 : i32
    return %c0_i32 : i32
  }
  func.func @transform_5(%arg0: i32) -> i32 {
    %c0_i32 = arith.constant 0 : i32
    %c0_i32_0 = arith.constant 0 : i32
    return %c0_i32 : i32
  }
}

</mosaic_0001>

<bundles_post_ra>
// kernel: tpu_custom_call.1
= control target key start
LH: loop header
LB: loop body
LE: loop exit
PB: predicated region body
PF: predicated region fallthrough
CT: control target
= control target key end

     0   :  { %13 = vsyncpa [#allocation7], 0  ;;  %s340_s0 = inlined_call_operand.<no memory space> [shape: f32[1], index: 0, kind: input, shape index: {}]   ;;  %s341_s1 = inlined_call_operand.<no memory space> [shape: s32[1], index: 1, kind: input, shape index: {}]   ;;  %s342_s2 = inlined_call_operand.hbm [shape: f32[16,128], index: 2, kind: input, shape index: {}]   ;;  %s343_s3 = inlined_call_operand.hbm [shape: f32[16,128], index: 3, kind: input, shape index: {}]   ;;  %s344_s4 = inlined_call_operand.hbm [shape: f32[1], index: 4, kind: output, shape index: {0}]   ;;  %s345_s5 = inlined_call_operand.hbm [shape: f32[1], index: 5, kind: output, shape index: {1}]  }
   0x1   :  { %14 = vsyncpa [#allocation10], 0 }
   0x2   :  { %15 = vsyncpa [#allocation8], 0 }
   0x3   :  { %16 = vsyncpa [#allocation13], 0  ;;  %s249_s18 = smov [#allocation6]   ;;  %s177_s22 = scalar_lea.hbm %s342_s2, 256 }
   0x4   :  { %s26_s19 = sshll.u32 %s249_s18, 4  ;;  %p178_p0 = scmp.ne.s32.totalorder %s342_s2, %s177_s22  ;;  %s27_s19 = int_to_ptr.vmem [resolvable:$true] %s26_s19 }
   0x5   :  { %p181_p1 = scmp.lt.u32.totalorder %s177_s22, %s342_s2 }
   0x7   :  { %p183_p2 = pnand %p181_p1, %p178_p0 }
   0x9   :  { %186 = shalt.err (!%p183_p2)
}
   0xa   :  { %s187_s27 = scalar_lea.vmem %s27_s19, 256  ;;  %p192_p4 = scmp.lt.s32.totalorder %s27_s19, %s27_s19 }
   0xb   :  { %p188_p3 = scmp.ne.s32.totalorder %s27_s19, %s187_s27  ;;  %p193_p5 = scmp.lt.s32.totalorder %s187_s27, %s187_s27 }
   0xd   :  { %p194_p6 = por %p193_p5, %p192_p4 }
   0xf   :  { %p195_p7 = pnand %p194_p6, %p188_p3 }
  0x11   :  { %198 = shalt.err (!%p195_p7)
}
  0x12   :  { %s250_s28 = smov 128   ;;  %s251_s29 = smov 8  }
  0x13   :  { %32 = dma.hbm_to_vmem [thread:$0]  %s342_s2, 256, %s27_s19, [#allocation7], %s250_s28, %s250_s28, %s251_s29  }
  0x14   :  { %s252_s7 = smov [#allocation9]   ;;  %s199_s11 = scalar_lea.hbm %s343_s3, 256 }
  0x15   :  { %s38_s8 = sshll.u32 %s252_s7, 4  ;;  %p200_p8 = scmp.ne.s32.totalorder %s343_s3, %s199_s11  ;;  %s39_s8 = int_to_ptr.vmem [resolvable:$true] %s38_s8 }
  0x16   :  { %p203_p9 = scmp.lt.u32.totalorder %s199_s11, %s343_s3 }
  0x18   :  { %p205_p10 = pnand %p203_p9, %p200_p8 }
  0x1a   :  { %208 = shalt.err (!%p205_p10)
}
  0x1b   :  { %s209_s16 = scalar_lea.vmem %s39_s8, 256  ;;  %p214_p12 = scmp.lt.s32.totalorder %s39_s8, %s39_s8 }
  0x1c   :  { %p210_p11 = scmp.ne.s32.totalorder %s39_s8, %s209_s16  ;;  %p215_p13 = scmp.lt.s32.totalorder %s209_s16, %s209_s16 }
  0x1e   :  { %p216_p0 = por %p215_p13, %p214_p12 }
  0x20   :  { %p217_p1 = pnand %p216_p0, %p210_p11 }
  0x22   :  { %220 = shalt.err (!%p217_p1)
}
  0x23   :  { %44 = dma.hbm_to_vmem [thread:$0]  %s343_s3, 256, %s39_s8, [#allocation10], %s250_s28, %s250_s28, %s251_s29  }
  0x24   :  { %241 = dma.done.wait [#allocation7], 256  }
  0x25   :  { %242 = vsyncadd [#allocation7], 4294967040 }
  0x26   :  { %243 = dma.done.wait [#allocation10], 256  }
  0x27   :  { %244 = vsyncadd [#allocation10], 4294967040  ;;  %v67_v0 = vlaneseq  ;;  %v61_v7 = vld [vmem:[#allocation9] sm:$0xff]  ;;  %v62_v8 = vld [vmem:[#allocation9 + $0x8] sm:$0xff]  ;;  %v80_v10 = vstv %s341_s1  ;;  %v85_v15 = vstv %s340_s0  ;;  %v253_v22 = vmov 0.0   ;;  %s221_s22 = scalar_lea.hbm %s344_s4, 16 }
  0x28   :  { %v63_v9 = vld [vmem:[#allocation6] sm:$0xff]  ;;  %v64_v11 = vld [vmem:[#allocation6 + $0x8] sm:$0xff]  ;;  %p222_p2 = scmp.ne.s32.totalorder %s344_s4, %s221_s22  ;;  %p225_p3 = scmp.lt.u32.totalorder %s221_s22, %s344_s4 }
  0x29   :  { %v68_v1 = vshrl.u32 %v67_v0, 7  ;;  %v71_v2 = vand.u32 127, %v67_v0  ;;  %v65_v12 = vsub.f32 %v61_v7, %v63_v9  ;;  %v66_v14 = vsub.f32 %v62_v8, %v64_v11 }
  0x2a   :  { %p227_p4 = pnand %p225_p3, %p222_p2 }
  0x2b   :  { %v69_v3 = vadd.s32 8, %v68_v1  ;;  %v76_v4 = vmul.u32 128, %v68_v1  ;;  %v83_v16 = vand.u32 2147483647, %v65_v12  ;;  %v92_v17 = vmul.f32 %v65_v12, %v65_v12 }
  0x2c   :  { %v84_v18 = vand.u32 2147483647, %v66_v14  ;;  %v93_v19 = vmul.f32 %v66_v14, %v66_v14 }
  0x2d   :  { %v77_v5 = vmul.u32 128, %v69_v3  ;;  %v78_v6 = vadd.s32 %v76_v4, %v71_v2  ;;  %vm86_vm2 = vcmp.gt.f32.partialorder %v83_v16, %v85_v15 }
  0x2e   :  { %vm87_vm3 = vcmp.gt.f32.partialorder %v84_v18, %v85_v15 }
  0x2f   :  { %v79_v13 = vadd.s32 %v77_v5, %v71_v2  ;;  %vm81_vm0 = vcmp.lt.s32.totalorder %v78_v6, %v80_v10 }
  0x30   :  { %vm88_vm4 = vmand %vm86_vm2, %vm81_vm0 }
  0x31   :  { %vm82_vm1 = vcmp.lt.s32.totalorder %v79_v13, %v80_v10  ;;  %v94_v20 = vsel %vm88_vm4, %v92_v17, 0.0  ;;  %v102_v23 = vsel %vm88_vm4, 1.0, %v253_v22 }
  0x32   :  { %vm89_vm5 = vmand %vm87_vm3, %vm82_vm1 }
  0x33   :  { %v95_v21 = vsel %vm89_vm5, %v93_v19, 0.0  ;;  %v103_v24 = vsel %vm89_vm5, 1.0, %v253_v22 }
  0x34   :  { %v113_v25 = vadd.f32 %v95_v21, %v94_v20  ;;  %v127_v26 = vadd.f32 %v103_v24, %v102_v23 }
  0x36   :  { %114 = vadd.xlane.f32.xlu0 %v113_v25 }
  0x3a   :  { %128 = vadd.xlane.f32.xlu0 %v127_v26 }
  0xc3   :  { %v115_v27 = vpop.xlane.xlu0 %114 }
  0xc4   :  { %v116_v28 = vrot.slane %v115_v27, 4 }
  0xc6   :  { %v117_v29 = vadd.f32 %v116_v28, %v115_v27 }
  0xc7   :  { %v129_v30 = vpop.xlane.xlu0 %128 }
  0xc8   :  { %v118_v31 = vrot.slane %v117_v29, 2  ;;  %v130_v32 = vrot.slane %v129_v30, 4 }
  0xca   :  { %v131_v33 = vadd.f32 %v130_v32, %v129_v30  ;;  %v119_v34 = vadd.f32 %v118_v31, %v117_v29 }
  0xcc   :  { %v132_v35 = vrot.slane %v131_v33, 2  ;;  %v120_v36 = vrot.slane %v119_v34, 1 }
  0xce   :  { %v133_v37 = vadd.f32 %v132_v35, %v131_v33  ;;  %v121_v38 = vadd.f32 %v120_v36, %v119_v34 }
  0xd0   :  { %166 = vpush %v121_v38  ;;  %v134_v39 = vrot.slane %v133_v37, 1 }
  0xd2   :  { %v135_v40 = vadd.f32 %v134_v39, %v133_v37 }
  0xd4   :  { %168 = vpush %v135_v40 }
 0x101   :  { %s167_s0 = spop %166 }
 0x102   :  { %124 = sst [smem:[#allocation11]] %s167_s0 }
 0x103   :  { %230 = shalt.err (!%p227_p4)
}
 0x104   :  { %s254_s27 = smov [#allocation11]   ;;  %s231_s8 = scalar_lea.hbm %s345_s5, 16 }
 0x105   :  { %146 = dma.smem_to_hbm %s254_s27, 16, %s344_s4, [#allocation8]  }
 0x106   :  { %s169_s30 = spop %168  ;;  %p232_p5 = scmp.ne.s32.totalorder %s345_s5, %s231_s8 }
 0x107   :  { %138 = sst [smem:[#allocation12]] %s169_s30  ;;  %p235_p6 = scmp.lt.u32.totalorder %s231_s8, %s345_s5 }
 0x109   :  { %p237_p7 = pnand %p235_p6, %p232_p5 }
 0x10b   :  { %240 = shalt.err (!%p237_p7)
}
 0x10c   :  { %s255_s13 = smov [#allocation12]  }
 0x10d   :  { %154 = dma.smem_to_hbm %s255_s13, 16, %s345_s5, [#allocation13]  }
 0x10e   :  { %245 = dma.done.wait [#allocation8], 16  }
 0x10f   :  { %246 = vsyncadd [#allocation8], 4294967280 }
 0x110   :  { %247 = dma.done.wait [#allocation13], 16  }
 0x111   :  { %248 = vsyncadd [#allocation13], 4294967280 }
 0x112   :  { %161 = sfence }
 0x113   :  { %162 = vsyncpa [#allocation7], 1 }
 0x114   :  { %163 = vsyncpa [#allocation10], 1 }
 0x115   :  { %164 = vsyncpa [#allocation8], 1 }
 0x116   :  { %165 = vsyncpa [#allocation13], 1 }

</bundles_post_ra>
